<compile_context>
chip_gen: v7x
topology: tpu7x:2x2x1
jax: 0.10.0
libtpu: 0.0.40
codegen_flags: <defaults>
</compile_context>

<pallas_src>
import functools

import jax
import jax.numpy as jnp
from jax.experimental import pallas as pl
from jax.experimental.pallas import tpu as pltpu


def _round_up(a: int, b: int) -> int:
    return (a + b - 1) // b * b


def _rmse_partial_kernel(x_ref, y_ref, o_ref, acc_ref, *,
                         n_rows: int, row_tile: int, slab: int,
                         blocks_per_core: int, needs_mask: bool):
    c = pl.program_id(0)           # per-core partial-sum axis ("parallel")
    i = pl.program_id(1)           # streaming reduction axis ("arbitrary")
    n_cols = x_ref.shape[1]
    n_slabs = row_tile // slab

    # Zero this core's vreg-scale accumulator at the start of its row range.
    @pl.when(i == 0)
    def _():
        acc_ref[...] = jnp.zeros_like(acc_ref)

    # Global row index of the first row of this block.
    base_row = (c * blocks_per_core + i) * row_tile

    def accum(masked: bool):
        def step(j, carry):
            r0 = pl.multiple_of(j * slab, slab)
            xs = x_ref[pl.ds(r0, slab), :].astype(jnp.float32)
            ys = y_ref[pl.ds(r0, slab), :].astype(jnp.float32)
            d = xs - ys
            sq = d * d
            if masked:
                rows = (base_row + r0
                        + jax.lax.broadcasted_iota(jnp.int32, (slab, n_cols), 0))
                sq = jnp.where(rows < n_rows, sq, 0.0)
            return carry + sq
        return jax.lax.fori_loop(0, n_slabs, step,
                                 jnp.zeros((slab, n_cols), jnp.float32))

    if needs_mask:
        # Only blocks that overrun the real row range (ragged tail / virtual
        # blocks from the core split) pay for the per-element mask.
        overrun = base_row + row_tile > n_rows

        @pl.when(jnp.logical_not(overrun))
        def _():
            acc_ref[...] += accum(masked=False)

        @pl.when(overrun)
        def _():
            acc_ref[...] += accum(masked=True)
    else:
        acc_ref[...] += accum(masked=False)

    # Single cross-lane (XLU) reduce, once per core.
    @pl.when(i == pl.num_programs(1) - 1)
    def _():
        o_ref[...] = jnp.sum(acc_ref[...]).reshape(1, 1, 1)


def rmse_loss(x: jax.Array, y: jax.Array, *,
              target_block_bytes: int = 8 * 1024 * 1024,
              num_cores: int = 2) -> jax.Array:
    assert x.shape == y.shape, "x and y must have the same shape"
    n = int(x.size)
    assert n > 0, "RMSELoss needs at least one element"

    # MSE math is done in f32 (kernel casts per-slab); promote int inputs.
    if not jnp.issubdtype(x.dtype, jnp.floating):
        x = x.astype(jnp.float32)
    if not jnp.issubdtype(y.dtype, jnp.floating):
        y = y.astype(jnp.float32)

    xf = x.reshape(-1)
    yf = y.reshape(-1)

    # Lane-dense re-tiling: view the flat stream as (n_rows, C) with C a
    # multiple of 128 and n_rows a multiple of 8; no copy when a candidate
    # width divides the element count.
    n_pad = n
    C = None
    for cand in (512, 384, 256, 128):
        if n % (8 * cand) == 0:
            C = cand
            break
    if C is None:
        # TODO(synk): a 1-D tail kernel (or ragged lane masking) would remove
        # this copy; it only fires when n is not a multiple of 8*128.
        C = 512
        n_pad = _round_up(n, 8 * C)
        xf = jnp.pad(xf, (0, n_pad - n))   # zero pad -> contributes 0 to sum
        yf = jnp.pad(yf, (0, n_pad - n))
    n_rows = n_pad // C
    x2 = xf.reshape(n_rows, C)
    y2 = yf.reshape(n_rows, C)

    itemsize = max(jnp.dtype(x2.dtype).itemsize, jnp.dtype(y2.dtype).itemsize)

    # Row tile: biggest block (multiple of 32 rows) within the byte target,
    # but small enough that big inputs still split across cores / pipeline.
    rows_target = max(8, (int(target_block_bytes) // (C * itemsize)) // 32 * 32)
    row_tile = min(rows_target, n_rows)          # n_rows is a multiple of 8
    split_cap = (n_rows // (2 * max(1, num_cores))) // 32 * 32
    if split_cap >= 32:
        row_tile = min(row_tile, split_cap)
    slab = 8                                     # inner register-tile rows
    for cand in (32, 16):
        if row_tile % cand == 0:
            slab = cand
            break

    total_blocks = pl.cdiv(n_rows, row_tile)
    cores = max(1, min(num_cores, total_blocks))  # leading "parallel" axis
    blocks_per_core = pl.cdiv(total_blocks, cores)
    virtual_blocks = cores * blocks_per_core
    needs_clamp = virtual_blocks > total_blocks
    needs_mask = virtual_blocks * row_tile > n_rows

    def in_index_map(c, i):
        b = c * blocks_per_core + i
        if needs_clamp:
            # Virtual blocks re-read the last real block; their rows are
            # fully masked in-kernel, so the redundant DMA is harmless.
            b = jnp.minimum(b, total_blocks - 1)
        return (b, 0)

    kernel = functools.partial(
        _rmse_partial_kernel, n_rows=n_rows, row_tile=row_tile, slab=slab,
        blocks_per_core=blocks_per_core, needs_mask=needs_mask)

    # VMEM budget: 2 inputs x 2 pipeline buffers x block + tiny accumulator.
    block_bytes = row_tile * C * itemsize
    vmem_limit = 4 * block_bytes + slab * C * 4 + (2 << 20)
    vmem_limit = int(min(44 * 1024 * 1024, max(4 * 1024 * 1024, vmem_limit)))

    partials = pl.pallas_call(
        kernel,
        out_shape=jax.ShapeDtypeStruct((cores, 1, 1), jnp.float32),
        grid_spec=pltpu.PrefetchScalarGridSpec(
            num_scalar_prefetch=0,
            grid=(cores, blocks_per_core),
            in_specs=[
                pl.BlockSpec((row_tile, C), in_index_map),
                pl.BlockSpec((row_tile, C), in_index_map),
            ],
            out_specs=pl.BlockSpec((1, 1, 1), lambda c, i: (c, 0, 0)),
            scratch_shapes=[pltpu.VMEM((slab, C), jnp.float32)],
        ),
        compiler_params=pltpu.CompilerParams(
            dimension_semantics=("parallel", "arbitrary"),
            vmem_limit_bytes=vmem_limit,
        ),
    )(x2, y2)

    # Epilogue over the per-core partial sums; divide by the UNPADDED count.
    total = jnp.sum(partials)
    return jnp.sqrt(total / float(n) + 1e-6)


if __name__ == "__main__":
    key = jax.random.PRNGKey(0)
    k = jax.random.split(key, 8)

    def ref_rmse(x, y):
        d = x.astype(jnp.float32) - y.astype(jnp.float32)
        return jnp.sqrt(jnp.mean(d * d) + 1e-6)

    # Case 1: typical DeepFM usage — 1-D prediction/target vectors (batch=64).
    x1 = jax.random.normal(k[0], (64,), dtype=jnp.float32)
    y1 = jax.random.normal(k[1], (64,), dtype=jnp.float32)
    out1 = rmse_loss(x1, y1)
    jax.block_until_ready(out1)
    assert jnp.allclose(out1, ref_rmse(x1, y1), rtol=1e-5, atol=1e-6), (out1, ref_rmse(x1, y1))

    # Case 2: bf16 inputs, awkward 2-D shape (native-dtype + flat-tail path).
    x2 = jax.random.normal(k[2], (50, 96), dtype=jnp.bfloat16)
    y2 = jax.random.normal(k[3], (50, 96), dtype=jnp.bfloat16)
    out2 = rmse_loss(x2, y2)
    jax.block_until_ready(out2)
    assert jnp.allclose(out2, ref_rmse(x2, y2), rtol=1e-5, atol=1e-6), (out2, ref_rmse(x2, y2))

    # Case 3: multi-block grid + 2-way "parallel" core split (small
    # target_block_bytes just to exercise the multi-block path at test size).
    x3 = jax.random.normal(k[4], (1000, 64), dtype=jnp.float32)
    y3 = jax.random.normal(k[5], (1000, 64), dtype=jnp.float32)
    out3 = rmse_loss(x3, y3, target_block_bytes=96 * 512 * 4)
    jax.block_until_ready(out3)
    assert jnp.allclose(out3, ref_rmse(x3, y3), rtol=1e-5, atol=1e-6), (out3, ref_rmse(x3, y3))

    # Case 4: odd block count -> clamped virtual block + in-kernel row masking.
    x4 = jax.random.normal(k[6], (40, 128), dtype=jnp.float32)
    y4 = jax.random.normal(k[7], (40, 128), dtype=jnp.float32)
    out4 = rmse_loss(x4, y4, target_block_bytes=8 * 128 * 4 * 2)
    jax.block_until_ready(out4)
    assert jnp.allclose(out4, ref_rmse(x4, y4), rtol=1e-5, atol=1e-6), (out4, ref_rmse(x4, y4))

    print("KERNEL_OK")
</pallas_src>

<mosaic_0001>
module attributes {stable_mosaic.version = 11 : i64} {
  func.func @_rmse_partial_kernel(%arg0: i32, %arg1: i32, %arg2: memref<8x512xf32, #tpu.memory_space<vmem>>, %arg3: memref<8x512xf32, #tpu.memory_space<vmem>>, %arg4: memref<1x1x1xf32, #tpu.memory_space<vmem>>, %arg5: memref<8x512xf32, #tpu.memory_space<vmem>>) attributes {dimension_semantics = [#tpu.dimension_semantics<parallel>, #tpu.dimension_semantics<arbitrary>], iteration_bounds = array<i64: 1, 1>, scalar_prefetch = 0 : i64, scratch_operands = 1 : i64, tpu.core_type = #tpu.core_type<tc>, window_params = [{transform_indices = @transform_0, window_bounds = array<i64: 8, 512>}, {transform_indices = @transform_1, window_bounds = array<i64: 8, 512>}, {transform_indices = @transform_2, window_bounds = array<i64: 1, 1, 1>}]} {
    %c0_i32 = arith.constant 0 : i32
    %0 = arith.cmpi eq, %arg1, %c0_i32 : i32
    %1 = arith.extui %0 : i1 to i32
    %c0_i32_0 = arith.constant 0 : i32
    %2 = arith.cmpi ne, %1, %c0_i32_0 : i32
    scf.if %2 {
      %cst_9 = arith.constant 0.000000e+00 : f32
      %19 = vector.broadcast %cst_9 : f32 to vector<8x512xf32>
      %c0_10 = arith.constant 0 : index
      %c0_11 = arith.constant 0 : index
      %20 = vector.load %arg5[%c0_10, %c0_11] : memref<8x512xf32, #tpu.memory_space<vmem>>, vector<8x512xf32>
      tpu.vector_store %arg5[%c0_10, %c0_11], %19 {strides = array<i32>} : memref<8x512xf32, #tpu.memory_space<vmem>>, vector<8x512xf32>,
    } else {
    }
    %c0 = arith.constant 0 : index
    %c0_1 = arith.constant 0 : index
    %3 = vector.load %arg5[%c0, %c0_1] : memref<8x512xf32, #tpu.memory_space<vmem>>, vector<8x512xf32>
    %cst = arith.constant 0.000000e+00 : f32
    %4 = vector.broadcast %cst : f32 to vector<8x512xf32>
    %c0_i32_2 = arith.constant 0 : i32
    %c8_i32 = arith.constant 8 : i32
    %5 = arith.muli %c0_i32_2, %c8_i32 : i32
    %6 = tpu.assume_multiple %5, 8 : i32
    %7 = arith.index_cast %6 : i32 to index
    %c0_3 = arith.constant 0 : index
    %8 = vector.load %arg2[%7, %c0_3] : memref<8x512xf32, #tpu.memory_space<vmem>>, vector<8x512xf32>
    %9 = arith.index_cast %6 : i32 to index
    %c0_4 = arith.constant 0 : index
    %10 = vector.load %arg3[%9, %c0_4] : memref<8x512xf32, #tpu.memory_space<vmem>>, vector<8x512xf32>
    %11 = arith.subf %8, %10 : vector<8x512xf32>
    %12 = arith.mulf %11, %11 : vector<8x512xf32>
    %13 = arith.addf %4, %12 : vector<8x512xf32>
    %c1_i32 = arith.constant 1 : i32
    %14 = arith.addf %3, %13 : vector<8x512xf32>
    %c0_5 = arith.constant 0 : index
    %c0_6 = arith.constant 0 : index
    %15 = vector.load %arg5[%c0_5, %c0_6] : memref<8x512xf32, #tpu.memory_space<vmem>>, vector<8x512xf32>
    tpu.vector_store %arg5[%c0_5, %c0_6], %14 {strides = array<i32>} : memref<8x512xf32, #tpu.memory_space<vmem>>, vector<8x512xf32>,
    %c0_i32_7 = arith.constant 0 : i32
    %16 = arith.cmpi eq, %arg1, %c0_i32_7 : i32
    %17 = arith.extui %16 : i1 to i32
    %c0_i32_8 = arith.constant 0 : i32
    %18 = arith.cmpi ne, %17, %c0_i32_8 : i32
    scf.if %18 {
      %c0_9 = arith.constant 0 : index
      %c0_10 = arith.constant 0 : index
      %19 = vector.load %arg5[%c0_9, %c0_10] : memref<8x512xf32, #tpu.memory_space<vmem>>, vector<8x512xf32>
      %20 = vector.shape_cast %19 : vector<8x512xf32> to vector<1x8x512xf32>
      %cst_11 = arith.constant dense<0.000000e+00> : vector<1xf32>
      %21 = vector.multi_reduction <add>, %20, %cst_11 [1, 2] : vector<1x8x512xf32> to vector<1xf32>
      %22 = vector.shape_cast %21 : vector<1xf32> to vector<1x1x1xf32>
      %23 = vector.extract %22[0, 0, 0] : f32 from vector<1x1x1xf32>
      %24 = vector.broadcast %23 : f32 to vector<1x1x1xf32>
      %c0_12 = arith.constant 0 : index
      %c0_13 = arith.constant 0 : index
      %c0_14 = arith.constant 0 : index
      %25 = vector.load %arg4[%c0_12, %c0_13, %c0_14] : memref<1x1x1xf32, #tpu.memory_space<vmem>>, vector<1x1x1xf32>
      tpu.vector_store %arg4[%c0_12, %c0_13, %c0_14], %24 {strides = array<i32>} : memref<1x1x1xf32, #tpu.memory_space<vmem>>, vector<1x1x1xf32>,
    } else {
    }
    return
  }
  func.func @transform_0(%arg0: i32, %arg1: i32) -> (i32, i32) {
    %c1_i32 = arith.constant 1 : i32
    %0 = arith.muli %arg0, %c1_i32 : i32
    %1 = arith.addi %0, %arg1 : i32
    %c0_i32 = arith.constant 0 : i32
    %c0_i32_0 = arith.constant 0 : i32
    return %1, %c0_i32 : i32, i32
  }
  func.func @transform_1(%arg0: i32, %arg1: i32) -> (i32, i32) {
    %c1_i32 = arith.constant 1 : i32
    %0 = arith.muli %arg0, %c1_i32 : i32
    %1 = arith.addi %0, %arg1 : i32
    %c0_i32 = arith.constant 0 : i32
    %c0_i32_0 = arith.constant 0 : i32
    return %1, %c0_i32 : i32, i32
  }
  func.func @transform_2(%arg0: i32, %arg1: i32) -> (i32, i32, i32) {
    %c0_i32 = arith.constant 0 : i32
    %c0_i32_0 = arith.constant 0 : i32
    %c0_i32_1 = arith.constant 0 : i32
    return %arg0, %c0_i32, %c0_i32_0 : i32, i32, i32
  }
}

</mosaic_0001>

<bundles_post_ra>
// kernel: tpu_custom_call.1
= control target key start
LH: loop header
LB: loop body
LE: loop exit
PB: predicated region body
PF: predicated region fallthrough
CT: control target
= control target key end

     0   :  { %7 = vsyncpa [#allocation4], 0  ;;  %s260_s0 = inlined_call_operand.hbm [shape: f32[8,512], index: 0, kind: input, shape index: {}]   ;;  %s261_s1 = inlined_call_operand.hbm [shape: f32[8,512], index: 1, kind: input, shape index: {}]   ;;  %s262_s2 = inlined_call_operand.hbm [shape: f32[1,1,1], index: 2, kind: output, shape index: {}]  }
   0x1   :  { %8 = vsyncpa [#allocation7], 0 }
   0x2   :  { %9 = vsyncpa [#allocation5], 0  ;;  %s206_s9 = smov [#allocation3]   ;;  %s207_s11 = smov [#allocation6]  }
   0x3   :  { %s20_s10 = sshll.u32 %s206_s9, 4  ;;  %s34_s12 = sshll.u32 %s207_s11, 4  ;;  %s21_s10 = int_to_ptr.vmem [resolvable:$true] %s20_s10  ;;  %s35_s12 = int_to_ptr.vmem [resolvable:$true] %s34_s12 }
   0x4   :  { %s134_s15 = scalar_lea.hbm %s260_s0, 512 }
   0x5   :  { %p135_p0 = scmp.ne.s32.totalorder %s260_s0, %s134_s15  ;;  %p138_p1 = scmp.lt.u32.totalorder %s134_s15, %s260_s0 }
   0x7   :  { %p140_p2 = pnand %p138_p1, %p135_p0 }
   0x9   :  { %143 = shalt.err (!%p140_p2)
}
   0xa   :  { %s144_s20 = scalar_lea.vmem %s21_s10, 512  ;;  %p149_p4 = scmp.lt.s32.totalorder %s21_s10, %s21_s10 }
   0xb   :  { %p145_p3 = scmp.ne.s32.totalorder %s21_s10, %s144_s20  ;;  %p150_p5 = scmp.lt.s32.totalorder %s144_s20, %s144_s20 }
   0xd   :  { %p151_p6 = por %p150_p5, %p149_p4 }
   0xf   :  { %p152_p7 = pnand %p151_p6, %p145_p3 }
  0x11   :  { %155 = shalt.err (!%p152_p7)
}
  0x12   :  { %23 = dma.hbm_to_vmem [thread:$0]  %s260_s0, 512, %s21_s10, [#allocation4]  }
  0x13   :  { %s156_s25 = scalar_lea.hbm %s261_s1, 512 }
  0x14   :  { %p157_p8 = scmp.ne.s32.totalorder %s261_s1, %s156_s25  ;;  %p160_p9 = scmp.lt.u32.totalorder %s156_s25, %s261_s1 }
  0x16   :  { %p162_p10 = pnand %p160_p9, %p157_p8 }
  0x18   :  { %165 = shalt.err (!%p162_p10)
}
  0x19   :  { %s166_s30 = scalar_lea.vmem %s35_s12, 512  ;;  %p171_p12 = scmp.lt.s32.totalorder %s35_s12, %s35_s12 }
  0x1a   :  { %p167_p11 = scmp.ne.s32.totalorder %s35_s12, %s166_s30  ;;  %p172_p13 = scmp.lt.s32.totalorder %s166_s30, %s166_s30 }
  0x1c   :  { %p173_p0 = por %p172_p13, %p171_p12 }
  0x1e   :  { %p174_p1 = pnand %p173_p0, %p167_p11 }
  0x20   :  { %177 = shalt.err (!%p174_p1)
}
  0x21   :  { %37 = dma.hbm_to_vmem [thread:$0]  %s261_s1, 512, %s35_s12, [#allocation7]  }
  0x22   :  { %200 = dma.done.wait [#allocation4], 512  }
  0x23   :  { %201 = vsyncadd [#allocation4], 4294966784 }
  0x24   :  { %202 = dma.done.wait [#allocation7], 512  }
  0x25   :  { %203 = vsyncadd [#allocation7], 4294966784  ;;  %v61_v0 = vld [vmem:[#allocation3] sm:$0xff]  ;;  %v62_v1 = vld [vmem:[#allocation3 + $0x8] sm:$0xff]  ;;  %s208_s1 = smov [#allocation8]   ;;  %vm111_vm0 = vcmask 0  }
  0x26   :  { %v63_v2 = vld [vmem:[#allocation3 + $0x10] sm:$0xff]  ;;  %v64_v3 = vld [vmem:[#allocation3 + $0x18] sm:$0xff]  ;;  %v67_v4 = vld [vmem:[#allocation6] sm:$0xff]  ;;  %s119_s4 = sshll.u32 %s208_s1, 4  ;;  %s120_s4 = int_to_ptr.vmem [resolvable:$true] %s119_s4 }
  0x27   :  { %v68_v5 = vld [vmem:[#allocation6 + $0x8] sm:$0xff]  ;;  %v69_v6 = vld [vmem:[#allocation6 + $0x10] sm:$0xff]  ;;  %v70_v7 = vld [vmem:[#allocation6 + $0x18] sm:$0xff]  ;;  %v71_v8 = vsub.f32 %v61_v0, %v67_v4  ;;  %s178_s6 = scalar_lea.vmem %s120_s4, 16  ;;  %s182_s7 = scalar_lea.vmem %s120_s4, 32 }
  0x28   :  { %v72_v9 = vsub.f32 %v62_v1, %v68_v5  ;;  %v73_v10 = vsub.f32 %v63_v2, %v69_v6  ;;  %v74_v11 = vsub.f32 %v64_v3, %v70_v7  ;;  %p179_p2 = scmp.ne.s32.totalorder %s120_s4, %s178_s6  ;;  %p183_p3 = scmp.lt.s32.totalorder %s120_s4, %s120_s4 }
  0x29   :  { %v75_v12 = vmul.f32 %v71_v8, %v71_v8  ;;  %p184_p4 = scmp.lt.s32.totalorder %s182_s7, %s178_s6 }
  0x2a   :  { %v76_v13 = vmul.f32 %v72_v9, %v72_v9  ;;  %v77_v14 = vmul.f32 %v73_v10, %v73_v10  ;;  %v78_v15 = vmul.f32 %v74_v11, %v74_v11 }
  0x2b   :  { %p185_p5 = por %p184_p4, %p183_p3 }
  0x2c   :  { %v98_v16 = vadd.f32 %v76_v13, %v75_v12 }
  0x2d   :  { %p186_p6 = pnand %p185_p5, %p179_p2 }
  0x2e   :  { %v99_v17 = vadd.f32 %v98_v16, %v77_v14 }
  0x30   :  { %v100_v18 = vadd.f32 %v99_v17, %v78_v15 }
  0x32   :  { %101 = vadd.xlane.f32.xlu0 %v100_v18 }
  0xbf   :  { %v102_v19 = vpop.xlane.xlu0 %101 }
  0xc0   :  { %v103_v20 = vrot.slane %v102_v19, 4 }
  0xc2   :  { %v104_v21 = vadd.f32 %v103_v20, %v102_v19 }
  0xc4   :  { %v105_v22 = vrot.slane %v104_v21, 2 }
  0xc6   :  { %v106_v23 = vadd.f32 %v105_v22, %v104_v21 }
  0xc8   :  { %v107_v24 = vrot.slane %v106_v23, 1 }
  0xca   :  { %v108_v25 = vadd.f32 %v107_v24, %v106_v23 }
  0xcc   :  { %129 = vpush %v108_v25 }
  0xfd   :  { %s130_s5 = spop %129 }
  0xfe   :  { %v110_v26 = vstv %s130_s5 }
  0xff   :  { %112 = vst.msk [vmem:[#allocation8] sm:$0x1] %vm111_vm0, %v110_v26 }
 0x100   :  { %189 = shalt.err (!%p186_p6)
}
 0x101   :  { %s190_s10 = scalar_lea.hbm %s262_s2, 16 }
 0x102   :  { %p191_p7 = scmp.ne.s32.totalorder %s262_s2, %s190_s10  ;;  %p194_p8 = scmp.lt.u32.totalorder %s190_s10, %s262_s2 }
 0x104   :  { %p196_p9 = pnand %p194_p8, %p191_p7 }
 0x106   :  { %199 = shalt.err (!%p196_p9)
}
 0x107   :  { %122 = dma.vmem_to_hbm [thread:$0]  %s120_s4, 16, %s262_s2, [#allocation5]  }
 0x108   :  { %204 = dma.done.wait [#allocation5], 16  }
 0x109   :  { %205 = vsyncadd [#allocation5], 4294967280 }
 0x10a   :  { %126 = vsyncpa [#allocation4], 1 }
 0x10b   :  { %127 = vsyncpa [#allocation7], 1 }
 0x10c   :  { %128 = vsyncpa [#allocation5], 1 }

</bundles_post_ra>
